<compile_context>
chip_gen: v7x
topology: tpu7x:2x2x1
jax: 0.10.0
libtpu: 0.0.40
codegen_flags: <defaults>
</compile_context>

<pallas_src>
import functools

import jax
import jax.numpy as jnp
from jax import lax
from jax.experimental import pallas as pl
from jax.experimental.pallas import tpu as pltpu


# ------------------------------ fused kernel ------------------------------

def _bottleneck_kernel(x_ref, w1_ref, b1_ref, w2_ref, b2_ref, w3_ref, b3_ref,
                       mask_ref, o_ref, *scratch,
                       W, HW, PAD, mid, cin, out_c, stride):
    f32 = jnp.float32
    y1p_ref = scratch[0]                                  # (mid, HW + 2*PAD)
    xp_ref = scratch[1] if stride == 2 else None          # (cin, HW + 2*PAD)

    x = x_ref[0]                                          # (cin, H*W) lane-dense slab

    # ---- conv1: grouped 1x1 (dense block-diag, shuffle + BN1 folded) + ReLU ----
    y1 = jnp.dot(w1_ref[...], x, preferred_element_type=f32)
    y1 = jnp.maximum(y1 + b1_ref[...], 0.0)               # (mid, HW)

    # ---- conv2: 3x3 depthwise (padding=1, BN2 folded) + ReLU ----
    # Taps are static lane-offset slices of a flat zero-padded scratch;
    # column wrap-around between rows is killed by precomputed per-tap masks.
    y1p_ref[:, :PAD] = jnp.zeros((mid, PAD), f32)          # halo only, aligned
    y1p_ref[:, PAD + HW:] = jnp.zeros((mid, PAD), f32)
    y1p_ref[:, PAD:PAD + HW] = y1                          # aligned interior store
    acc = jnp.zeros((mid, HW), f32)
    t = 0
    for dh in (-1, 0, 1):
        for dw in (-1, 0, 1):
            lo = PAD + dh * W + dw
            tap = y1p_ref[:, lo:lo + HW]                   # (mid, HW)
            acc = acc + w2_ref[:, t:t + 1] * (mask_ref[t:t + 1, :] * tap)
            t += 1
    y2 = jnp.maximum(acc + b2_ref[...], 0.0)               # (mid, HW)

    # ---- conv3: grouped 1x1 (dense block-diag, BN3 folded) ----
    y3 = jnp.dot(w3_ref[...], y2, preferred_element_type=f32) + b3_ref[...]

    if stride == 1:
        # identity shortcut (cin == out_c, asserted in the wrapper) + ReLU
        o_ref[0] = jnp.maximum(y3 + x, 0.0)
    else:
        o_ref[0, :out_c] = jnp.maximum(y3, 0.0)
        # ---- shortcut: AvgPool2d(3, stride=2, padding=1) on x ----
        # Computed at full resolution (exact stride-2 subsample is a strided
        # slice in the wrapper).
        xp_ref[:, :PAD] = jnp.zeros((cin, PAD), f32)
        xp_ref[:, PAD + HW:] = jnp.zeros((cin, PAD), f32)
        xp_ref[:, PAD:PAD + HW] = x
        pacc = jnp.zeros((cin, HW), f32)
        t = 0
        for dh in (-1, 0, 1):
            for dw in (-1, 0, 1):
                lo = PAD + dh * W + dw
                pacc = pacc + mask_ref[t:t + 1, :] * xp_ref[:, lo:lo + HW]
                t += 1
        o_ref[0, out_c:] = jnp.maximum(pacc * (1.0 / 9.0), 0.0)


# ------------------------------ host wrapper ------------------------------

def bn_affine(gamma, beta, mean, var, eps=1e-5):
    scale = gamma / jnp.sqrt(var + eps)
    shift = beta - mean * scale
    return scale, shift


def bottleneck_forward(params, x_nchw, in_channels, out_channels, stride, groups):
    mid = out_channels // 4
    g = params['g']
    N, Cin, H, W = x_nchw.shape
    assert Cin == in_channels
    if stride == 1:
        assert in_channels == out_channels, \
            "stride=1 identity shortcut requires in_channels == out_channels"
    HW = H * W
    PAD = ((W + 2 + 127) // 128) * 128            # lane-tile-aligned halo pad
    C_total = out_channels + (Cin if stride == 2 else 0)

    cin_g = Cin // g
    mid_g1 = mid // g
    mid_g3 = mid // groups
    out_cg = out_channels // groups

    s1, t1 = bn_affine(*params['bn1'])
    s2, t2 = bn_affine(*params['bn2'])
    s3, t3 = bn_affine(*params['bn3'])

    # conv1 -> dense block-diagonal (mid, Cin) with BN1 scale folded, then the
    # channel shuffle folded as a row permutation (kernel output is already in
    # shuffled order).
    w1_scaled = params['w1'] * s1[:, None]                         # (mid, cin_g)
    rows1 = jnp.arange(mid)[:, None]
    cols1 = (rows1 // mid_g1) * cin_g + jnp.arange(cin_g)[None, :]
    w1_dense = jnp.zeros((mid, Cin), jnp.float32).at[rows1, cols1].set(w1_scaled)
    perm = jnp.asarray([(c % g) * mid_g1 + (c // g) for c in range(mid)], jnp.int32)
    w1f = w1_dense[perm]                                           # (mid, Cin)
    b1f = t1[perm].reshape(mid, 1)

    # conv2 depthwise taps with BN2 scale folded.
    w2f = (params['w2'].reshape(mid, 9) * s2[:, None]).astype(jnp.float32)
    b2f = t2.reshape(mid, 1)

    # conv3 -> dense block-diagonal (out_c, mid) with BN3 scale folded.
    w3_scaled = params['w3'] * s3[:, None]                         # (out_c, mid_g3)
    rows3 = jnp.arange(out_channels)[:, None]
    cols3 = (rows3 // out_cg) * mid_g3 + jnp.arange(mid_g3)[None, :]
    w3f = jnp.zeros((out_channels, mid), jnp.float32).at[rows3, cols3].set(w3_scaled)
    b3f = t3.reshape(out_channels, 1)

    # Per-tap boundary masks over the flat H*W lanes (hoisted out of the kernel).
    idx = jnp.arange(HW)
    hh, ww = idx // W, idx % W
    masks = jnp.stack([
        (((hh + dh) >= 0) & ((hh + dh) < H) &
         ((ww + dw) >= 0) & ((ww + dw) < W)).astype(jnp.float32)
        for dh in (-1, 0, 1) for dw in (-1, 0, 1)])                # (9, HW)

    kernel = functools.partial(
        _bottleneck_kernel, W=W, HW=HW, PAD=PAD, mid=mid, cin=Cin,
        out_c=out_channels, stride=stride)

    x_flat = x_nchw.reshape(N, Cin, HW).astype(jnp.float32)

    scratch_shapes = [pltpu.VMEM((mid, HW + 2 * PAD), jnp.float32)]
    if stride == 2:
        scratch_shapes.append(pltpu.VMEM((Cin, HW + 2 * PAD), jnp.float32))

    vmem_est = 4 * ((2 * Cin + 2 * C_total + 9) * HW
                    + (mid + (Cin if stride == 2 else 0)) * (HW + 2 * PAD)
                    + mid * (Cin + 11) + out_channels * (mid + 1)) + (4 << 20)
    vmem_limit = int(min(max(vmem_est, 8 << 20), 48 << 20))

    out_flat = pl.pallas_call(
        kernel,
        out_shape=jax.ShapeDtypeStruct((N, C_total, HW), jnp.float32),
        grid=(N,),
        in_specs=[
            pl.BlockSpec((1, Cin, HW), lambda n: (n, 0, 0)),
            pl.BlockSpec((mid, Cin), lambda n: (0, 0)),
            pl.BlockSpec((mid, 1), lambda n: (0, 0)),
            pl.BlockSpec((mid, 9), lambda n: (0, 0)),
            pl.BlockSpec((mid, 1), lambda n: (0, 0)),
            pl.BlockSpec((out_channels, mid), lambda n: (0, 0)),
            pl.BlockSpec((out_channels, 1), lambda n: (0, 0)),
            pl.BlockSpec((9, HW), lambda n: (0, 0)),
        ],
        out_specs=pl.BlockSpec((1, C_total, HW), lambda n: (n, 0, 0)),
        scratch_shapes=scratch_shapes,
        compiler_params=pltpu.CompilerParams(
            dimension_semantics=("parallel",),
            vmem_limit_bytes=vmem_limit),
    )(x_flat, w1f, b1f, w2f, b2f, w3f, b3f, masks)

    out = out_flat.reshape(N, C_total, H, W)
    if stride == 2:
        # Exact stride-2 subsample (1x1 conv / BN / ReLU / avg-pool / concat all
        # commute with spatial subsampling) — pure layout plumbing in XLA.
        out = out[:, :, ::2, ::2]
    return out


# ------------------------------ parameters --------------------------------

def init_params(key, in_channels, out_channels, groups):
    mid = out_channels // 4
    g = 1 if in_channels == 24 else groups
    ks = jax.random.split(key, 6)
    p = {'g': g}
    p['w1'] = 0.2 * jax.random.normal(ks[0], (mid, in_channels // g), jnp.float32)
    p['w2'] = 0.2 * jax.random.normal(ks[1], (mid, 3, 3), jnp.float32)
    p['w3'] = 0.2 * jax.random.normal(ks[2], (out_channels, mid // groups), jnp.float32)

    def bn(k, c):
        k1, k2, k3, k4 = jax.random.split(k, 4)
        gamma = 1.0 + 0.1 * jax.random.normal(k1, (c,), jnp.float32)
        beta = 0.1 * jax.random.normal(k2, (c,), jnp.float32)
        mean = 0.1 * jax.random.normal(k3, (c,), jnp.float32)
        var = jnp.abs(jax.random.normal(k4, (c,), jnp.float32)) + 0.5
        return gamma, beta, mean, var

    p['bn1'] = bn(ks[3], mid)
    p['bn2'] = bn(ks[4], mid)
    p['bn3'] = bn(ks[5], out_channels)
    return p


# ------------------------- pure-JAX reference (lax) ------------------------

def bottleneck_reference(params, x, in_channels, out_channels, stride, groups):
    mid = out_channels // 4
    g = params['g']
    eps = 1e-5
    dn = ('NCHW', 'OIHW', 'NCHW')

    def bn_apply(y, bnp):
        gamma, beta, mean, var = bnp
        rs = lambda v: v.reshape(1, -1, 1, 1)
        return (y - rs(mean)) / jnp.sqrt(rs(var) + eps) * rs(gamma) + rs(beta)

    w1 = params['w1'].reshape(mid, in_channels // g, 1, 1)
    out = lax.conv_general_dilated(x, w1, (1, 1), 'VALID',
                                   dimension_numbers=dn, feature_group_count=g)
    out = jax.nn.relu(bn_apply(out, params['bn1']))
    N, C, H, W = out.shape
    out = out.reshape(N, g, C // g, H, W).transpose(0, 2, 1, 3, 4).reshape(N, C, H, W)
    w2 = params['w2'].reshape(mid, 1, 3, 3)
    out = lax.conv_general_dilated(out, w2, (stride, stride), ((1, 1), (1, 1)),
                                   dimension_numbers=dn, feature_group_count=mid)
    out = jax.nn.relu(bn_apply(out, params['bn2']))
    w3 = params['w3'].reshape(out_channels, mid // groups, 1, 1)
    out = lax.conv_general_dilated(out, w3, (1, 1), 'VALID',
                                   dimension_numbers=dn, feature_group_count=groups)
    out = bn_apply(out, params['bn3'])
    if stride == 2:
        res = lax.reduce_window(x, 0.0, lax.add, (1, 1, 3, 3), (1, 1, 2, 2),
                                ((0, 0), (0, 0), (1, 1), (1, 1))) / 9.0
        return jax.nn.relu(jnp.concatenate([out, res], axis=1))
    return jax.nn.relu(out + x)


# ---------------------------------- main -----------------------------------

if __name__ == "__main__":
    key = jax.random.PRNGKey(0)
    k_x, k_p1, k_p2 = jax.random.split(key, 3)

    # Config A: stride=2 (avg-pool shortcut + channel concat)
    in_c, out_c, groups, stride = 8, 16, 2, 2
    x = jax.random.normal(k_x, (2, in_c, 16, 16), jnp.float32)
    params = init_params(k_p1, in_c, out_c, groups)
    y = jax.block_until_ready(
        bottleneck_forward(params, x, in_c, out_c, stride, groups))
    y_ref = bottleneck_reference(params, x, in_c, out_c, stride, groups)
    assert y.shape == (2, out_c + in_c, 8, 8), y.shape
    assert jnp.allclose(y, y_ref, rtol=1e-4, atol=1e-4), \
        float(jnp.max(jnp.abs(y - y_ref)))

    # Config B: stride=1 (identity shortcut + residual add)
    in_c2, out_c2, groups2, stride2 = 16, 16, 2, 1
    x2 = jax.random.normal(k_x, (2, in_c2, 16, 16), jnp.float32)
    params2 = init_params(k_p2, in_c2, out_c2, groups2)
    y2 = jax.block_until_ready(
        bottleneck_forward(params2, x2, in_c2, out_c2, stride2, groups2))
    y2_ref = bottleneck_reference(params2, x2, in_c2, out_c2, stride2, groups2)
    assert y2.shape == (2, out_c2, 16, 16), y2.shape
    assert jnp.allclose(y2, y2_ref, rtol=1e-4, atol=1e-4), \
        float(jnp.max(jnp.abs(y2 - y2_ref)))

    print("KERNEL_OK")
</pallas_src>

<mosaic_0001>
module attributes {stable_mosaic.version = 11 : i64} {
  func.func @_bottleneck_kernel(%arg0: i32, %arg1: memref<1x8x256xf32, #tpu.memory_space<vmem>>, %arg2: memref<4x8xf32, #tpu.memory_space<vmem>>, %arg3: memref<4x1xf32, #tpu.memory_space<vmem>>, %arg4: memref<4x9xf32, #tpu.memory_space<vmem>>, %arg5: memref<4x1xf32, #tpu.memory_space<vmem>>, %arg6: memref<16x4xf32, #tpu.memory_space<vmem>>, %arg7: memref<16x1xf32, #tpu.memory_space<vmem>>, %arg8: memref<9x256xf32, #tpu.memory_space<vmem>>, %arg9: memref<1x24x256xf32, #tpu.memory_space<vmem>>, %arg10: memref<4x512xf32, #tpu.memory_space<vmem>>, %arg11: memref<8x512xf32, #tpu.memory_space<vmem>>) attributes {dimension_semantics = [#tpu.dimension_semantics<parallel>], iteration_bounds = array<i64: 2>, scalar_prefetch = 0 : i64, scratch_operands = 2 : i64, tpu.core_type = #tpu.core_type<tc>, window_params = [{transform_indices = @transform_0, window_bounds = array<i64: 1, 8, 256>}, {pipeline_mode = #tpu.pipeline_mode<synchronous>, transform_indices = @transform_1, window_bounds = array<i64: 4, 8>}, {pipeline_mode = #tpu.pipeline_mode<synchronous>, transform_indices = @transform_2, window_bounds = array<i64: 4, 1>}, {pipeline_mode = #tpu.pipeline_mode<synchronous>, transform_indices = @transform_3, window_bounds = array<i64: 4, 9>}, {pipeline_mode = #tpu.pipeline_mode<synchronous>, transform_indices = @transform_4, window_bounds = array<i64: 4, 1>}, {pipeline_mode = #tpu.pipeline_mode<synchronous>, transform_indices = @transform_5, window_bounds = array<i64: 16, 4>}, {pipeline_mode = #tpu.pipeline_mode<synchronous>, transform_indices = @transform_6, window_bounds = array<i64: 16, 1>}, {pipeline_mode = #tpu.pipeline_mode<synchronous>, transform_indices = @transform_7, window_bounds = array<i64: 9, 256>}, {transform_indices = @transform_8, window_bounds = array<i64: 1, 24, 256>}]} {
    %c0 = arith.constant 0 : index
    %c0_0 = arith.constant 0 : index
    %c0_1 = arith.constant 0 : index
    %0 = vector.load %arg1[%c0, %c0_0, %c0_1] : memref<1x8x256xf32, #tpu.memory_space<vmem>>, vector<1x8x256xf32>
    %1 = vector.shape_cast %0 : vector<1x8x256xf32> to vector<8x256xf32>
    %c0_2 = arith.constant 0 : index
    %c0_3 = arith.constant 0 : index
    %2 = vector.load %arg2[%c0_2, %c0_3] : memref<4x8xf32, #tpu.memory_space<vmem>>, vector<4x8xf32>
    %cst = arith.constant dense<0.000000e+00> : vector<4x256xf32>
    %3 = tpu.matmul %2, %1, %cst {dimension_numbers = #tpu.dot_dimension_numbers<[1], [0], [0], [1], [0, 0, 1, 1], [], []>} : vector<4x8xf32>, vector<8x256xf32>, vector<4x256xf32> -> vector<4x256xf32>
    %c0_4 = arith.constant 0 : index
    %c0_5 = arith.constant 0 : index
    %4 = vector.load %arg3[%c0_4, %c0_5] : memref<4x1xf32, #tpu.memory_space<vmem>>, vector<4x1xf32>
    %5 = vector.broadcast %4 : vector<4x1xf32> to vector<4x256xf32>
    %6 = arith.addf %3, %5 : vector<4x256xf32>
    %cst_6 = arith.constant 0.000000e+00 : f32
    %7 = vector.broadcast %cst_6 : f32 to vector<4x256xf32>
    %8 = arith.maximumf %6, %7 : vector<4x256xf32>
    %cst_7 = arith.constant 0.000000e+00 : f32
    %9 = vector.broadcast %cst_7 : f32 to vector<4x128xf32>
    %c0_8 = arith.constant 0 : index
    %c0_9 = arith.constant 0 : index
    %10 = vector.load %arg10[%c0_8, %c0_9] : memref<4x512xf32, #tpu.memory_space<vmem>>, vector<4x128xf32>
    tpu.vector_store %arg10[%c0_8, %c0_9], %9 {strides = array<i32>} : memref<4x512xf32, #tpu.memory_space<vmem>>, vector<4x128xf32>,
    %cst_10 = arith.constant 0.000000e+00 : f32
    %11 = vector.broadcast %cst_10 : f32 to vector<4x128xf32>
    %c0_11 = arith.constant 0 : index
    %c384 = arith.constant 384 : index
    %12 = vector.load %arg10[%c0_11, %c384] : memref<4x512xf32, #tpu.memory_space<vmem>>, vector<4x128xf32>
    tpu.vector_store %arg10[%c0_11, %c384], %11 {strides = array<i32>} : memref<4x512xf32, #tpu.memory_space<vmem>>, vector<4x128xf32>,
    %c0_12 = arith.constant 0 : index
    %c128 = arith.constant 128 : index
    %13 = vector.load %arg10[%c0_12, %c128] : memref<4x512xf32, #tpu.memory_space<vmem>>, vector<4x256xf32>
    tpu.vector_store %arg10[%c0_12, %c128], %8 {strides = array<i32>} : memref<4x512xf32, #tpu.memory_space<vmem>>, vector<4x256xf32>,
    %cst_13 = arith.constant 0.000000e+00 : f32
    %14 = vector.broadcast %cst_13 : f32 to vector<4x256xf32>
    %c0_14 = arith.constant 0 : index
    %c111 = arith.constant 111 : index
    %15 = vector.load %arg10[%c0_14, %c111] : memref<4x512xf32, #tpu.memory_space<vmem>>, vector<4x256xf32>
    %c0_15 = arith.constant 0 : index
    %c0_16 = arith.constant 0 : index
    %16 = vector.load %arg4[%c0_15, %c0_16] : memref<4x9xf32, #tpu.memory_space<vmem>>, vector<4x1xf32>
    %c0_17 = arith.constant 0 : index
    %c0_18 = arith.constant 0 : index
    %17 = vector.load %arg8[%c0_17, %c0_18] : memref<9x256xf32, #tpu.memory_space<vmem>>, vector<1x256xf32>
    %18 = vector.broadcast %17 : vector<1x256xf32> to vector<4x256xf32>
    %19 = arith.mulf %18, %15 : vector<4x256xf32>
    %20 = vector.broadcast %16 : vector<4x1xf32> to vector<4x256xf32>
    %21 = arith.mulf %20, %19 : vector<4x256xf32>
    %22 = arith.addf %14, %21 : vector<4x256xf32>
    %c0_19 = arith.constant 0 : index
    %c112 = arith.constant 112 : index
    %23 = vector.load %arg10[%c0_19, %c112] : memref<4x512xf32, #tpu.memory_space<vmem>>, vector<4x256xf32>
    %c0_20 = arith.constant 0 : index
    %c1 = arith.constant 1 : index
    %24 = vector.load %arg4[%c0_20, %c1] : memref<4x9xf32, #tpu.memory_space<vmem>>, vector<4x1xf32>
    %c1_21 = arith.constant 1 : index
    %c0_22 = arith.constant 0 : index
    %25 = vector.load %arg8[%c1_21, %c0_22] : memref<9x256xf32, #tpu.memory_space<vmem>>, vector<1x256xf32>
    %26 = vector.broadcast %25 : vector<1x256xf32> to vector<4x256xf32>
    %27 = arith.mulf %26, %23 : vector<4x256xf32>
    %28 = vector.broadcast %24 : vector<4x1xf32> to vector<4x256xf32>
    %29 = arith.mulf %28, %27 : vector<4x256xf32>
    %30 = arith.addf %22, %29 : vector<4x256xf32>
    %c0_23 = arith.constant 0 : index
    %c113 = arith.constant 113 : index
    %31 = vector.load %arg10[%c0_23, %c113] : memref<4x512xf32, #tpu.memory_space<vmem>>, vector<4x256xf32>
    %c0_24 = arith.constant 0 : index
    %c2 = arith.constant 2 : index
    %32 = vector.load %arg4[%c0_24, %c2] : memref<4x9xf32, #tpu.memory_space<vmem>>, vector<4x1xf32>
    %c2_25 = arith.constant 2 : index
    %c0_26 = arith.constant 0 : index
    %33 = vector.load %arg8[%c2_25, %c0_26] : memref<9x256xf32, #tpu.memory_space<vmem>>, vector<1x256xf32>
    %34 = vector.broadcast %33 : vector<1x256xf32> to vector<4x256xf32>
    %35 = arith.mulf %34, %31 : vector<4x256xf32>
    %36 = vector.broadcast %32 : vector<4x1xf32> to vector<4x256xf32>
    %37 = arith.mulf %36, %35 : vector<4x256xf32>
    %38 = arith.addf %30, %37 : vector<4x256xf32>
    %c0_27 = arith.constant 0 : index
    %c127 = arith.constant 127 : index
    %39 = vector.load %arg10[%c0_27, %c127] : memref<4x512xf32, #tpu.memory_space<vmem>>, vector<4x256xf32>
    %c0_28 = arith.constant 0 : index
    %c3 = arith.constant 3 : index
    %40 = vector.load %arg4[%c0_28, %c3] : memref<4x9xf32, #tpu.memory_space<vmem>>, vector<4x1xf32>
    %c3_29 = arith.constant 3 : index
    %c0_30 = arith.constant 0 : index
    %41 = vector.load %arg8[%c3_29, %c0_30] : memref<9x256xf32, #tpu.memory_space<vmem>>, vector<1x256xf32>
    %42 = vector.broadcast %41 : vector<1x256xf32> to vector<4x256xf32>
    %43 = arith.mulf %42, %39 : vector<4x256xf32>
    %44 = vector.broadcast %40 : vector<4x1xf32> to vector<4x256xf32>
    %45 = arith.mulf %44, %43 : vector<4x256xf32>
    %46 = arith.addf %38, %45 : vector<4x256xf32>
    %c0_31 = arith.constant 0 : index
    %c128_32 = arith.constant 128 : index
    %47 = vector.load %arg10[%c0_31, %c128_32] : memref<4x512xf32, #tpu.memory_space<vmem>>, vector<4x256xf32>
    %c0_33 = arith.constant 0 : index
    %c4 = arith.constant 4 : index
    %48 = vector.load %arg4[%c0_33, %c4] : memref<4x9xf32, #tpu.memory_space<vmem>>, vector<4x1xf32>
    %c4_34 = arith.constant 4 : index
    %c0_35 = arith.constant 0 : index
    %49 = vector.load %arg8[%c4_34, %c0_35] : memref<9x256xf32, #tpu.memory_space<vmem>>, vector<1x256xf32>
    %50 = vector.broadcast %49 : vector<1x256xf32> to vector<4x256xf32>
    %51 = arith.mulf %50, %47 : vector<4x256xf32>
    %52 = vector.broadcast %48 : vector<4x1xf32> to vector<4x256xf32>
    %53 = arith.mulf %52, %51 : vector<4x256xf32>
    %54 = arith.addf %46, %53 : vector<4x256xf32>
    %c0_36 = arith.constant 0 : index
    %c129 = arith.constant 129 : index
    %55 = vector.load %arg10[%c0_36, %c129] : memref<4x512xf32, #tpu.memory_space<vmem>>, vector<4x256xf32>
    %c0_37 = arith.constant 0 : index
    %c5 = arith.constant 5 : index
    %56 = vector.load %arg4[%c0_37, %c5] : memref<4x9xf32, #tpu.memory_space<vmem>>, vector<4x1xf32>
    %c5_38 = arith.constant 5 : index
    %c0_39 = arith.constant 0 : index
    %57 = vector.load %arg8[%c5_38, %c0_39] : memref<9x256xf32, #tpu.memory_space<vmem>>, vector<1x256xf32>
    %58 = vector.broadcast %57 : vector<1x256xf32> to vector<4x256xf32>
    %59 = arith.mulf %58, %55 : vector<4x256xf32>
    %60 = vector.broadcast %56 : vector<4x1xf32> to vector<4x256xf32>
    %61 = arith.mulf %60, %59 : vector<4x256xf32>
    %62 = arith.addf %54, %61 : vector<4x256xf32>
    %c0_40 = arith.constant 0 : index
    %c143 = arith.constant 143 : index
    %63 = vector.load %arg10[%c0_40, %c143] : memref<4x512xf32, #tpu.memory_space<vmem>>, vector<4x256xf32>
    %c0_41 = arith.constant 0 : index
    %c6 = arith.constant 6 : index
    %64 = vector.load %arg4[%c0_41, %c6] : memref<4x9xf32, #tpu.memory_space<vmem>>, vector<4x1xf32>
    %c6_42 = arith.constant 6 : index
    %c0_43 = arith.constant 0 : index
    %65 = vector.load %arg8[%c6_42, %c0_43] : memref<9x256xf32, #tpu.memory_space<vmem>>, vector<1x256xf32>
    %66 = vector.broadcast %65 : vector<1x256xf32> to vector<4x256xf32>
    %67 = arith.mulf %66, %63 : vector<4x256xf32>
    %68 = vector.broadcast %64 : vector<4x1xf32> to vector<4x256xf32>
    %69 = arith.mulf %68, %67 : vector<4x256xf32>
    %70 = arith.addf %62, %69 : vector<4x256xf32>
    %c0_44 = arith.constant 0 : index
    %c144 = arith.constant 144 : index
    %71 = vector.load %arg10[%c0_44, %c144] : memref<4x512xf32, #tpu.memory_space<vmem>>, vector<4x256xf32>
    %c0_45 = arith.constant 0 : index
    %c7 = arith.constant 7 : index
    %72 = vector.load %arg4[%c0_45, %c7] : memref<4x9xf32, #tpu.memory_space<vmem>>, vector<4x1xf32>
    %c7_46 = arith.constant 7 : index
    %c0_47 = arith.constant 0 : index
    %73 = vector.load %arg8[%c7_46, %c0_47] : memref<9x256xf32, #tpu.memory_space<vmem>>, vector<1x256xf32>
    %74 = vector.broadcast %73 : vector<1x256xf32> to vector<4x256xf32>
    %75 = arith.mulf %74, %71 : vector<4x256xf32>
    %76 = vector.broadcast %72 : vector<4x1xf32> to vector<4x256xf32>
    %77 = arith.mulf %76, %75 : vector<4x256xf32>
    %78 = arith.addf %70, %77 : vector<4x256xf32>
    %c0_48 = arith.constant 0 : index
    %c145 = arith.constant 145 : index
    %79 = vector.load %arg10[%c0_48, %c145] : memref<4x512xf32, #tpu.memory_space<vmem>>, vector<4x256xf32>
    %c0_49 = arith.constant 0 : index
    %c8 = arith.constant 8 : index
    %80 = vector.load %arg4[%c0_49, %c8] : memref<4x9xf32, #tpu.memory_space<vmem>>, vector<4x1xf32>
    %c8_50 = arith.constant 8 : index
    %c0_51 = arith.constant 0 : index
    %81 = vector.load %arg8[%c8_50, %c0_51] : memref<9x256xf32, #tpu.memory_space<vmem>>, vector<1x256xf32>
    %82 = vector.broadcast %81 : vector<1x256xf32> to vector<4x256xf32>
    %83 = arith.mulf %82, %79 : vector<4x256xf32>
    %84 = vector.broadcast %80 : vector<4x1xf32> to vector<4x256xf32>
    %85 = arith.mulf %84, %83 : vector<4x256xf32>
    %86 = arith.addf %78, %85 : vector<4x256xf32>
    %c0_52 = arith.constant 0 : index
    %c0_53 = arith.constant 0 : index
    %87 = vector.load %arg5[%c0_52, %c0_53] : memref<4x1xf32, #tpu.memory_space<vmem>>, vector<4x1xf32>
    %88 = vector.broadcast %87 : vector<4x1xf32> to vector<4x256xf32>
    %89 = arith.addf %86, %88 : vector<4x256xf32>
    %cst_54 = arith.constant 0.000000e+00 : f32
    %90 = vector.broadcast %cst_54 : f32 to vector<4x256xf32>
    %91 = arith.maximumf %89, %90 : vector<4x256xf32>
    %c0_55 = arith.constant 0 : index
    %c0_56 = arith.constant 0 : index
    %92 = vector.load %arg6[%c0_55, %c0_56] : memref<16x4xf32, #tpu.memory_space<vmem>>, vector<16x4xf32>
    %cst_57 = arith.constant dense<0.000000e+00> : vector<16x256xf32>
    %93 = tpu.matmul %92, %91, %cst_57 {dimension_numbers = #tpu.dot_dimension_numbers<[1], [0], [0], [1], [0, 0, 1, 1], [], []>} : vector<16x4xf32>, vector<4x256xf32>, vector<16x256xf32> -> vector<16x256xf32>
    %c0_58 = arith.constant 0 : index
    %c0_59 = arith.constant 0 : index
    %94 = vector.load %arg7[%c0_58, %c0_59] : memref<16x1xf32, #tpu.memory_space<vmem>>, vector<16x1xf32>
    %95 = vector.broadcast %94 : vector<16x1xf32> to vector<16x256xf32>
    %96 = arith.addf %93, %95 : vector<16x256xf32>
    %cst_60 = arith.constant 0.000000e+00 : f32
    %97 = vector.broadcast %cst_60 : f32 to vector<16x256xf32>
    %98 = arith.maximumf %96, %97 : vector<16x256xf32>
    %c0_61 = arith.constant 0 : index
    %c0_62 = arith.constant 0 : index
    %c0_63 = arith.constant 0 : index
    %99 = vector.load %arg9[%c0_61, %c0_62, %c0_63] : memref<1x24x256xf32, #tpu.memory_space<vmem>>, vector<1x16x256xf32>
    %100 = vector.shape_cast %99 : vector<1x16x256xf32> to vector<16x256xf32>
    %101 = vector.shape_cast %98 : vector<16x256xf32> to vector<1x16x256xf32>
    tpu.vector_store %arg9[%c0_61, %c0_62, %c0_63], %101 {strides = array<i32>} : memref<1x24x256xf32, #tpu.memory_space<vmem>>, vector<1x16x256xf32>,
    %cst_64 = arith.constant 0.000000e+00 : f32
    %102 = vector.broadcast %cst_64 : f32 to vector<8x128xf32>
    %c0_65 = arith.constant 0 : index
    %c0_66 = arith.constant 0 : index
    %103 = vector.load %arg11[%c0_65, %c0_66] : memref<8x512xf32, #tpu.memory_space<vmem>>, vector<8x128xf32>
    tpu.vector_store %arg11[%c0_65, %c0_66], %102 {strides = array<i32>} : memref<8x512xf32, #tpu.memory_space<vmem>>, vector<8x128xf32>,
    %cst_67 = arith.constant 0.000000e+00 : f32
    %104 = vector.broadcast %cst_67 : f32 to vector<8x128xf32>
    %c0_68 = arith.constant 0 : index
    %c384_69 = arith.constant 384 : index
    %105 = vector.load %arg11[%c0_68, %c384_69] : memref<8x512xf32, #tpu.memory_space<vmem>>, vector<8x128xf32>
    tpu.vector_store %arg11[%c0_68, %c384_69], %104 {strides = array<i32>} : memref<8x512xf32, #tpu.memory_space<vmem>>, vector<8x128xf32>,
    %c0_70 = arith.constant 0 : index
    %c128_71 = arith.constant 128 : index
    %106 = vector.load %arg11[%c0_70, %c128_71] : memref<8x512xf32, #tpu.memory_space<vmem>>, vector<8x256xf32>
    tpu.vector_store %arg11[%c0_70, %c128_71], %1 {strides = array<i32>} : memref<8x512xf32, #tpu.memory_space<vmem>>, vector<8x256xf32>,
    %cst_72 = arith.constant 0.000000e+00 : f32
    %107 = vector.broadcast %cst_72 : f32 to vector<8x256xf32>
    %c0_73 = arith.constant 0 : index
    %c0_74 = arith.constant 0 : index
    %108 = vector.load %arg8[%c0_73, %c0_74] : memref<9x256xf32, #tpu.memory_space<vmem>>, vector<1x256xf32>
    %c0_75 = arith.constant 0 : index
    %c111_76 = arith.constant 111 : index
    %109 = vector.load %arg11[%c0_75, %c111_76] : memref<8x512xf32, #tpu.memory_space<vmem>>, vector<8x256xf32>
    %110 = vector.broadcast %108 : vector<1x256xf32> to vector<8x256xf32>
    %111 = arith.mulf %110, %109 : vector<8x256xf32>
    %112 = arith.addf %107, %111 : vector<8x256xf32>
    %c1_77 = arith.constant 1 : index
    %c0_78 = arith.constant 0 : index
    %113 = vector.load %arg8[%c1_77, %c0_78] : memref<9x256xf32, #tpu.memory_space<vmem>>, vector<1x256xf32>
    %c0_79 = arith.constant 0 : index
    %c112_80 = arith.constant 112 : index
    %114 = vector.load %arg11[%c0_79, %c112_80] : memref<8x512xf32, #tpu.memory_space<vmem>>, vector<8x256xf32>
    %115 = vector.broadcast %113 : vector<1x256xf32> to vector<8x256xf32>
    %116 = arith.mulf %115, %114 : vector<8x256xf32>
    %117 = arith.addf %112, %116 : vector<8x256xf32>
    %c2_81 = arith.constant 2 : index
    %c0_82 = arith.constant 0 : index
    %118 = vector.load %arg8[%c2_81, %c0_82] : memref<9x256xf32, #tpu.memory_space<vmem>>, vector<1x256xf32>
    %c0_83 = arith.constant 0 : index
    %c113_84 = arith.constant 113 : index
    %119 = vector.load %arg11[%c0_83, %c113_84] : memref<8x512xf32, #tpu.memory_space<vmem>>, vector<8x256xf32>
    %120 = vector.broadcast %118 : vector<1x256xf32> to vector<8x256xf32>
    %121 = arith.mulf %120, %119 : vector<8x256xf32>
    %122 = arith.addf %117, %121 : vector<8x256xf32>
    %c3_85 = arith.constant 3 : index
    %c0_86 = arith.constant 0 : index
    %123 = vector.load %arg8[%c3_85, %c0_86] : memref<9x256xf32, #tpu.memory_space<vmem>>, vector<1x256xf32>
    %c0_87 = arith.constant 0 : index
    %c127_88 = arith.constant 127 : index
    %124 = vector.load %arg11[%c0_87, %c127_88] : memref<8x512xf32, #tpu.memory_space<vmem>>, vector<8x256xf32>
    %125 = vector.broadcast %123 : vector<1x256xf32> to vector<8x256xf32>
    %126 = arith.mulf %125, %124 : vector<8x256xf32>
    %127 = arith.addf %122, %126 : vector<8x256xf32>
    %c4_89 = arith.constant 4 : index
    %c0_90 = arith.constant 0 : index
    %128 = vector.load %arg8[%c4_89, %c0_90] : memref<9x256xf32, #tpu.memory_space<vmem>>, vector<1x256xf32>
    %c0_91 = arith.constant 0 : index
    %c128_92 = arith.constant 128 : index
    %129 = vector.load %arg11[%c0_91, %c128_92] : memref<8x512xf32, #tpu.memory_space<vmem>>, vector<8x256xf32>
    %130 = vector.broadcast %128 : vector<1x256xf32> to vector<8x256xf32>
    %131 = arith.mulf %130, %129 : vector<8x256xf32>
    %132 = arith.addf %127, %131 : vector<8x256xf32>
    %c5_93 = arith.constant 5 : index
    %c0_94 = arith.constant 0 : index
    %133 = vector.load %arg8[%c5_93, %c0_94] : memref<9x256xf32, #tpu.memory_space<vmem>>, vector<1x256xf32>
    %c0_95 = arith.constant 0 : index
    %c129_96 = arith.constant 129 : index
    %134 = vector.load %arg11[%c0_95, %c129_96] : memref<8x512xf32, #tpu.memory_space<vmem>>, vector<8x256xf32>
    %135 = vector.broadcast %133 : vector<1x256xf32> to vector<8x256xf32>
    %136 = arith.mulf %135, %134 : vector<8x256xf32>
    %137 = arith.addf %132, %136 : vector<8x256xf32>
    %c6_97 = arith.constant 6 : index
    %c0_98 = arith.constant 0 : index
    %138 = vector.load %arg8[%c6_97, %c0_98] : memref<9x256xf32, #tpu.memory_space<vmem>>, vector<1x256xf32>
    %c0_99 = arith.constant 0 : index
    %c143_100 = arith.constant 143 : index
    %139 = vector.load %arg11[%c0_99, %c143_100] : memref<8x512xf32, #tpu.memory_space<vmem>>, vector<8x256xf32>
    %140 = vector.broadcast %138 : vector<1x256xf32> to vector<8x256xf32>
    %141 = arith.mulf %140, %139 : vector<8x256xf32>
    %142 = arith.addf %137, %141 : vector<8x256xf32>
    %c7_101 = arith.constant 7 : index
    %c0_102 = arith.constant 0 : index
    %143 = vector.load %arg8[%c7_101, %c0_102] : memref<9x256xf32, #tpu.memory_space<vmem>>, vector<1x256xf32>
    %c0_103 = arith.constant 0 : index
    %c144_104 = arith.constant 144 : index
    %144 = vector.load %arg11[%c0_103, %c144_104] : memref<8x512xf32, #tpu.memory_space<vmem>>, vector<8x256xf32>
    %145 = vector.broadcast %143 : vector<1x256xf32> to vector<8x256xf32>
    %146 = arith.mulf %145, %144 : vector<8x256xf32>
    %147 = arith.addf %142, %146 : vector<8x256xf32>
    %c8_105 = arith.constant 8 : index
    %c0_106 = arith.constant 0 : index
    %148 = vector.load %arg8[%c8_105, %c0_106] : memref<9x256xf32, #tpu.memory_space<vmem>>, vector<1x256xf32>
    %c0_107 = arith.constant 0 : index
    %c145_108 = arith.constant 145 : index
    %149 = vector.load %arg11[%c0_107, %c145_108] : memref<8x512xf32, #tpu.memory_space<vmem>>, vector<8x256xf32>
    %150 = vector.broadcast %148 : vector<1x256xf32> to vector<8x256xf32>
    %151 = arith.mulf %150, %149 : vector<8x256xf32>
    %152 = arith.addf %147, %151 : vector<8x256xf32>
    %cst_109 = arith.constant 0.111111112 : f32
    %153 = vector.broadcast %cst_109 : f32 to vector<8x256xf32>
    %154 = arith.mulf %152, %153 : vector<8x256xf32>
    %cst_110 = arith.constant 0.000000e+00 : f32
    %155 = vector.broadcast %cst_110 : f32 to vector<8x256xf32>
    %156 = arith.maximumf %154, %155 : vector<8x256xf32>
    %c0_111 = arith.constant 0 : index
    %c16 = arith.constant 16 : index
    %c0_112 = arith.constant 0 : index
    %157 = vector.load %arg9[%c0_111, %c16, %c0_112] : memref<1x24x256xf32, #tpu.memory_space<vmem>>, vector<1x8x256xf32>
    %158 = vector.shape_cast %157 : vector<1x8x256xf32> to vector<8x256xf32>
    %159 = vector.shape_cast %156 : vector<8x256xf32> to vector<1x8x256xf32>
    tpu.vector_store %arg9[%c0_111, %c16, %c0_112], %159 {strides = array<i32>} : memref<1x24x256xf32, #tpu.memory_space<vmem>>, vector<1x8x256xf32>,
    return
  }
  func.func @transform_0(%arg0: i32) -> (i32, i32, i32) {
    %c0_i32 = arith.constant 0 : i32
    %c0_i32_0 = arith.constant 0 : i32
    %c0_i32_1 = arith.constant 0 : i32
    return %arg0, %c0_i32, %c0_i32_0 : i32, i32, i32
  }
  func.func @transform_1(%arg0: i32) -> (i32, i32) {
    %c0_i32 = arith.constant 0 : i32
    %c0_i32_0 = arith.constant 0 : i32
    %c0_i32_1 = arith.constant 0 : i32
    return %c0_i32, %c0_i32_0 : i32, i32
  }
  func.func @transform_2(%arg0: i32) -> (i32, i32) {
    %c0_i32 = arith.constant 0 : i32
    %c0_i32_0 = arith.constant 0 : i32
    %c0_i32_1 = arith.constant 0 : i32
    return %c0_i32, %c0_i32_0 : i32, i32
  }
  func.func @transform_3(%arg0: i32) -> (i32, i32) {
    %c0_i32 = arith.constant 0 : i32
    %c0_i32_0 = arith.constant 0 : i32
    %c0_i32_1 = arith.constant 0 : i32
    return %c0_i32, %c0_i32_0 : i32, i32
  }
  func.func @transform_4(%arg0: i32) -> (i32, i32) {
    %c0_i32 = arith.constant 0 : i32
    %c0_i32_0 = arith.constant 0 : i32
    %c0_i32_1 = arith.constant 0 : i32
    return %c0_i32, %c0_i32_0 : i32, i32
  }
  func.func @transform_5(%arg0: i32) -> (i32, i32) {
    %c0_i32 = arith.constant 0 : i32
    %c0_i32_0 = arith.constant 0 : i32
    %c0_i32_1 = arith.constant 0 : i32
    return %c0_i32, %c0_i32_0 : i32, i32
  }
  func.func @transform_6(%arg0: i32) -> (i32, i32) {
    %c0_i32 = arith.constant 0 : i32
    %c0_i32_0 = arith.constant 0 : i32
    %c0_i32_1 = arith.constant 0 : i32
    return %c0_i32, %c0_i32_0 : i32, i32
  }
  func.func @transform_7(%arg0: i32) -> (i32, i32) {
    %c0_i32 = arith.constant 0 : i32
    %c0_i32_0 = arith.constant 0 : i32
    %c0_i32_1 = arith.constant 0 : i32
    return %c0_i32, %c0_i32_0 : i32, i32
  }
  func.func @transform_8(%arg0: i32) -> (i32, i32, i32) {
    %c0_i32 = arith.constant 0 : i32
    %c0_i32_0 = arith.constant 0 : i32
    %c0_i32_1 = arith.constant 0 : i32
    return %arg0, %c0_i32, %c0_i32_0 : i32, i32, i32
  }
}

</mosaic_0001>

<bundles_post_ra>
// kernel: tpu_custom_call.1
= control target key start
LH: loop header
LB: loop body
LE: loop exit
PB: predicated region body
PF: predicated region fallthrough
CT: control target
= control target key end

     0   :  { %13 = vsyncpa [#allocation5], 0  ;;  %s2049_s0 = inlined_call_operand.vmem [shape: f32[2,8,256], index: 0, kind: input, shape index: {}]   ;;  %s2050_s1 = inlined_call_operand.hbm [shape: f32[4,8], index: 1, kind: input, shape index: {}]   ;;  %s2051_s2 = inlined_call_operand.vmem [shape: f32[4,1], index: 2, kind: input, shape index: {}]   ;;  %s2052_s3 = inlined_call_operand.hbm [shape: f32[4,9], index: 3, kind: input, shape index: {}]   ;;  %s2053_s4 = inlined_call_operand.vmem [shape: f32[4,1], index: 4, kind: input, shape index: {}]   ;;  %s2054_s5 = inlined_call_operand.vmem [shape: f32[16,4], index: 5, kind: input, shape index: {}]   ;;  %s2055_s6 = inlined_call_operand.vmem [shape: f32[16,1], index: 6, kind: input, shape index: {}]   ;;  %s2056_s7 = inlined_call_operand.vmem [shape: f32[9,256], index: 7, kind: input, shape index: {}]   ;;  %s2057_s8 = inlined_call_operand.hbm [shape: f32[2,24,256], index: 8, kind: output, shape index: {}]  }
   0x1   :  { %14 = vsyncpa [#allocation8], 0 }
   0x2   :  { %15 = vsyncpa [#allocation6], 0 }
   0x3   :  { %17 = vsyncpa [#allocation6 + $0x1], 0  ;;  %s1570_s27 = smov 0   ;;  %s1572_s28 = smov 0  }
   0x4   :  { %s1574_s29 = smov 0   ;;  %s1576_s30 = smov 0  }
   0x5 LB: > { %s1591_s9 = sadd.s32 4294967295, %s1501_s30   ;;  %s1246_s10 = sadd.s32 4294967294, %s1501_s30   ;;  %s1501_s30 = sphi %s1576_s30, %s2075_s30   ;;  %s1497_s29 = sphi %s1574_s29, %s2074_s29   ;;  %s1493_s28 = sphi %s1572_s28, %s2073_s28   ;;  %s1489_s27 = sphi %s1570_s27, %s2072_s27  }
   0x6   : > { %s1595_s11 = sadd.s32 1, %s1501_s30   ;;  %s203_s12 = sadd.s32 1, %s1497_s29 }
   0x7   : > { %s200_s13 = ssub.s32 %s1501_s30, %s1595_s11  ;;  %p213_p0 = scmp.ne.s32.totalorder %s1497_s29, %s1493_s28 }
   0x8   : > { %p201_p1 = scmp.eq.s32.totalorder %s200_s13, 0  ;;  %p214_p2 = scmp.eq.s32.totalorder %s1591_s9, 1 }
   0x9   : > { %p219_p3 = scmp.ne.s32.totalorder %s1493_s28, %s1489_s27  ;;  %p220_p4 = scmp.eq.s32.totalorder %s1246_s10, 1 }
   0xa   : > { %s1606_s14 = scalar_select %p201_p1, %s1497_s29, %s203_s12  }
   0xb   : > { %p1608_p5 = por %p214_p2, %p213_p0  ;;  %p1612_p6 = por %p220_p4, %p219_p3 }
   0xc   : > { %p1247_p7 = scmp.ge.s32.totalorder %s1501_s30, 1  ;;  %p227_p8 = scmp.lt.s32.totalorder %s1501_s30, 3 }
   0xd   : > { %s2061_s15 = scalar_select %p1608_p5, 1, 0 }
   0xe   : > { %s2062_s16 = scalar_select %p1612_p6, 1, 0 }
   0xf   : > { %p2058_p9 = scmp.eq.s32.totalorder %s1591_s9, 0  ;;  %p1619_p10 = pnand %p1247_p7, %p227_p8 }
  0x10   : > { %s1503_s18 = smov [#allocation4]   ;;  %s1504_s20 = smov [#allocation7]  }
  0x11   : > { %s2063_s17 = scalar_select %p1619_p10, 1, 0 }
  0x12   : > { %s240_s19 = sshll.u32 %s1503_s18, 4  ;;  %p1293_p11 = pneg %p1619_p10  ;;  %s241_s19 = int_to_ptr.vmem [resolvable:$true] %s240_s19 }
  0x13   : > { %s254_s21 = sshll.u32 %s1504_s20, 4  ;;  %s1375_s25 = scalar_lea.hbm %s2050_s1, 64  ;;  %s1631_s21 = int_to_ptr.vmem [resolvable:$true] %s254_s21 }
  0x14   : > { %p1627_p12 = pnand %p2058_p9, %p1293_p11  ;;  %p1376_p13 = scmp.ne.s32.totalorder %s2050_s1, %s1375_s25 }
  0x15   : > { %p1382_p3 = scmp.lt.u32.totalorder %s1375_s25, %s2050_s1 }
  0x16   : > { %p1377_p0 = pneg %p1627_p12 }
  0x18   : > { %p1378_p1 = pnand %p1377_p0, %p1376_p13 }
  0x1a   : > { %p1379_p2 = pneg %p1378_p1 }
  0x1c   : > { %p1384_p4 = pnand %p1382_p3, %p1379_p2 }
  0x1e   : > { %1387 = shalt.err (!%p1384_p4)
}
  0x1f   : > { %s1388_s18 = scalar_lea.vmem %s241_s19, 64  ;;  %p1396_p9 = scmp.lt.s32.totalorder %s241_s19, %s241_s19 }
  0x20   : > { %p1389_p7 = scmp.ne.s32.totalorder %s241_s19, %s1388_s18  ;;  %p1397_p6 = scmp.lt.s32.totalorder %s1388_s18, %s1388_s18 }
  0x22   : > { %p1391_p8 = pnand %p1389_p7, %p1377_p0  ;;  %p1398_p5 = por %p1397_p6, %p1396_p9 }
  0x24   : > { %p1392_p11 = pneg %p1391_p8 }
  0x26   : > { %p1399_p10 = pnand %p1398_p5, %p1392_p11 }
  0x28   : > { %1402 = shalt.err (!%p1399_p10)
}
  0x29   : > { %1296 = dma.hbm_to_vmem [thread:$0]  (!%p1627_p12), %s2050_s1, 64, %s241_s19, [#allocation5]  }
  0x2a   : > { %s1403_s26 = scalar_lea.hbm %s2052_s3, 64 }
  0x2b   : > { %p1404_p13 = scmp.ne.s32.totalorder %s2052_s3, %s1403_s26  ;;  %p1410_p9 = scmp.lt.u32.totalorder %s1403_s26, %s2052_s3 }
  0x2d   : > { %p1406_p6 = pnand %p1404_p13, %p1377_p0 }
  0x2f   : > { %p1407_p5 = pneg %p1406_p6 }
  0x31   : > { %p1412_p10 = pnand %p1410_p9, %p1407_p5 }
  0x33   : > { %1415 = shalt.err (!%p1412_p10)
}
  0x34   : > { %s1416_s19 = scalar_lea.vmem %s1631_s21, 64  ;;  %p1424_p4 = scmp.lt.s32.totalorder %s1631_s21, %s1631_s21 }
  0x35   : > { %p1417_p1 = scmp.ne.s32.totalorder %s1631_s21, %s1416_s19  ;;  %p1425_p7 = scmp.lt.s32.totalorder %s1416_s19, %s1416_s19 }
  0x37   : > { %p1419_p2 = pnand %p1417_p1, %p1377_p0  ;;  %p1426_p8 = por %p1425_p7, %p1424_p4 }
  0x39   : > { %p1420_p3 = pneg %p1419_p2 }
  0x3b   : > { %p1427_p11 = pnand %p1426_p8, %p1420_p3 }
  0x3d   : > { %1430 = shalt.err (!%p1427_p11)
}
  0x3e   : > { %1299 = dma.hbm_to_vmem [thread:$0]  (!%p1627_p12), %s2052_s3, 64, %s1631_s21, [#allocation8]  }
  0x3f   : > { %p2065_p13 = scmp.ne.s32.totalorder %s2063_s17, 0 }
  0x40   : > { %p2066_p6 = scmp.eq.s32.totalorder (!%p2065_p13), %s1591_s9, 0 }
  0x41   : > { %287 = sbr.rel (%p2065_p13) target bundleno = 721 (0x2d1), region = 52 }
  0x48   : > { %1476 = dma.done.wait (%p2066_p6), [#allocation5], 64   ;;  %p2067_p0 = pmov %p2066_p6 }
  0x4a   : > { %1478 = vsyncadd (%p2067_p0), [#allocation5], 4294967232  ;;  %p2068_p5 = pmov %p2067_p0 }
  0x4b   : > { %p2069_p9 = pmov %p2067_p0 }
  0x4c   : > { %1480 = dma.done.wait (%p2068_p5), [#allocation8], 64  }
  0x4d   : > { %1482 = vsyncadd (%p2069_p9), [#allocation8], 4294967232  ;;  %p325_p10 = scmp.lt.s32.totalorder %s1591_s9, 1  ;;  %v1505_v0 = vmov 0.0   ;;  %v1506_v1 = vmov 0   ;;  %v1507_v2 = vmov 1   ;;  %v428_v62 = vlaneseq }
  0x4e   : > { %407 = vmatprep.mubr.f32.mxu0 %v1505_v0  ;;  %416 = vst [vmem:[#allocation2] sm:$0xf] %v1505_v0  ;;  %417 = vst [vmem:[#allocation2 + $0xc] sm:$0xf] %v1505_v0  ;;  %1362 = vset.pattern.permute.xlu0 %v1506_v1  ;;  %v332_v5 = vld [vmem:[#allocation4] sm:$0xf] }
  0x4f   : > { %s326_s17 = scalar_select %p325_p10, %s1591_s9, 1  ;;  %1363 = vset.pattern.permute.xlu1 %v1507_v2  ;;  %881 = vmatprep.mubr.f32.mxu1 %v1505_v0  ;;  %vm339_vm0 = vcmask 64512   ;;  %v333_v6 = vld [vmem:[%s2051_s2] sm:$0xf]  ;;  %v465_v7 = vld [vmem:[#allocation7] sm:$0xf] }
  0x50   : > { %336 = vperm.xlu0 %1362, %v333_v6   ;;  %497 = vperm.xlu1 %1363, %v465_v7   ;;  %v547_v8 = vld [vmem:[#allocation7] sm:$0xf]  ;;  %v1508_v10 = vmov 3   ;;  %v1509_v11 = vmov 2   ;;  %v1510_v14 = vmov 4   ;;  %v1511_v15 = vmov 5  }
  0x51   : > { %s1280_s21 = sshll.u32 %s326_s17, 4  ;;  %v506_v9 = vld [vmem:[#allocation7] sm:$0xf]  ;;  %v1512_v18 = vmov 7   ;;  %v1513_v19 = vmov 6   ;;  %s1514_s12 = smov 127  }
  0x52   : > { %s329_s25 = scalar_lea.vmem %s2049_s0, %s1280_s21  ;;  %v587_v12 = vld [vmem:[#allocation7] sm:$0xf]  ;;  %v1515_v22 = vmov 8   ;;  %s1516_s13 = smov 113   ;;  %v779_v42 = vld [vmem:[%s2053_s4] sm:$0xf] }
  0x53   : > { %v1699_v3 = vld [vmem:[%s329_s25 + $0x8] sm:$0xff]  ;;  %v1701_v4 = vld [vmem:[%s329_s25] sm:$0xff]  ;;  %v617_v13 = vld [vmem:[#allocation7] sm:$0xf]  ;;  %s1517_s18 = smov 111   ;;  %s1518_s19 = smov 112  }
  0x54   : > { %343 = vmatprep.subr.mxu0 %v1699_v3  ;;  %1365 = vset.pattern.permute.xlu0 %v1508_v10  ;;  %v699_v16 = vld [vmem:[#allocation7] sm:$0xf]  ;;  %s1519_s20 = smov 1   ;;  %s1520_s23 = smov 17   ;;  %v792_v43 = vld [vmem:[%s2055_s6 + $0x8] sm:$0xff]  ;;  %v791_v47 = vld [vmem:[%s2055_s6] sm:$0xff] }
  0x55   : > { %344 = vmatpush1.msra.mxu0 %v1701_v4  ;;  %579 = vperm.xlu0 %1365, %v547_v8   ;;  %v658_v17 = vld [vmem:[#allocation7] sm:$0xf]  ;;  %v616_v20 = vld [vmem:[#allocation2 + $0xc] sm:$0xf]  ;;  %s1521_s17 = smov 16   ;;  %s1522_s21 = smov 15  }
  0x56   : > { %1256 = vmatmul.mubr.msk.f32.vlgmr.msra.gmra.mrb[0].mxu0 %vm339_vm0, %v332_v5  ;;  %1364 = vset.pattern.permute.xlu1 %v1509_v11  ;;  %v425_v21 = vld [vmem:[#allocation7] sm:$0xf]  ;;  %v657_v24 = vld [vmem:[#allocation2 + $0xc] sm:$0xf]  ;;  %v429_v2 = vshrl.u32 %v428_v62, 7  ;;  %vm488_vm1 = vcmask 130048  }
  0x57   : > { %538 = vperm.xlu1 %1364, %v506_v9   ;;  %v740_v23 = vld [vmem:[#allocation7] sm:$0xf]  ;;  %v739_v25 = vld [vmem:[#allocation2 + $0xc] sm:$0xf]  ;;  %vm447_vm2 = vcmask 138240   ;;  %vm529_vm3 = vcmask 121856  }
  0x58   : > { %v698_v26 = vld [vmem:[#allocation2 + $0xc] sm:$0xf]  ;;  %v1826_v7 = vsub.s32 0, %v429_v2  ;;  %v1828_v8 = vsub.s32 1, %v429_v2  ;;  %vm640_vm4 = vcmask 1039360   ;;  %vm763_vm5 = vcmask 908288  }
  0x59   : > { %1366 = vset.pattern.permute.xlu0 %v1510_v14  ;;  %v1260_v9 = vld [vmem:[%s2056_s7 + $0x4] ss:$8 sm:$0x3]  ;;  %v1868_v62 = vld [vmem:[%s2056_s7 + $0x10] ss:$8 sm:$0x3] }
  0x5a   : > { %608 = vperm.xlu0 %1366, %v587_v12   ;;  %v594_v12 = vrot.slane %v1260_v9, %v1826_v7  ;;  %v598_v14 = vrot.slane %v1260_v9, %v1828_v8  ;;  %vm570_vm6 = vcmask 7168   ;;  %vm681_vm7 = vcmask 924672   ;;  %s1282_s25 = smul.u32 768, %s1591_s9  ;;  %p2070_p1 = scmp.ne.s32.totalorder %s2061_s15, 0 }
  0x5b   : > { %1367 = vset.pattern.permute.xlu1 %v1511_v15  ;;  %v426_v15 = vld [vmem:[%s2056_s7] ss:$8 sm:$0x3]  ;;  %vm722_vm8 = vcmask 916480   ;;  %vm810_vm9 = vcmask 1043456   ;;  %vm803_vm10 = vcmask 31744  }
  0x5c   : > { %649 = vperm.xlu1 %1367, %v617_v13   ;;  %v1257_v13 = vld [vmem:[%s2056_s7 + $0x1] ss:$8 sm:$0x3] }
  0x5e   : > { %1369 = vset.pattern.permute.xlu0 %v1512_v18  ;;  %v472_v18 = vrot.slane %v1257_v13, %v1826_v7 }
  0x5f   : > { %731 = vperm.xlu0 %1369, %v699_v16  }
  0x60   : > { %1368 = vset.pattern.permute.xlu1 %v1513_v19 }
  0x61   : > { %690 = vperm.xlu1 %1368, %v658_v17   ;;  %v1258_v17 = vld [vmem:[%s2056_s7 + $0x2] ss:$8 sm:$0x3] }
  0x63   : > { %1370 = vset.pattern.permute.xlu0 %v1506_v1 }
  0x64   : > { %456 = vperm.xlu0 %1370, %v425_v21   ;;  %v476_v21 = vrot.slane %v1257_v13, %v1828_v8 }
  0x65   : > { %638 = vrot.lane.b32.xlu1 %v616_v20, %s1514_s12 }
  0x66   : > { %1371 = vset.pattern.permute.xlu1 %v1515_v22 }
  0x68   : > { %679 = vrot.lane.b32.xlu0 %v657_v24, %s1516_s13  ;;  %v431_v24 = vrot.slane %v426_v15, %v1826_v7 }
  0x69   : > { %772 = vperm.xlu1 %1371, %v740_v23  }
  0x6c   : > { %720 = vrot.lane.b32.xlu0 %v698_v26, %s1518_s19  ;;  %v513_v26 = vrot.slane %v1258_v17, %v1826_v7 }
  0x6d   : > { %1372 = vset.pattern.permute.xlu1 %v1506_v1 }
  0x6e   : > { %761 = vrot.lane.b32.xlu1 %v739_v25, %s1517_s18 }
  0xcf   : > { %v337_v27 = vpop.permute.xlu0 %336  ;;  %v1777_v44 = vpop.permute.xlu1 %497 }
  0xd4   : > { %v1783_v45 = vpop.permute.xlu0 %579 }
  0xd6   : > { %v1785_v46 = vpop.permute.xlu1 %538 }
  0xd9   : > { %v609_v48 = vpop.permute.xlu0 %608 }
  0xdb   : > { %v1796_v49 = vpop.permute.xlu1 %649 }
  0xde   : > { %v1800_v50 = vpop.permute.xlu0 %731 }
  0xe0   : > { %v1802_v51 = vpop.permute.xlu1 %690 }
  0xe3   : > { %v1806_v52 = vpop.permute.xlu0 %456 }
  0xe4   : > { %v1810_v53 = vpop.permute.xlu1 %638 }
  0xe7   : > { %v1814_v55 = vpop.permute.xlu0 %679 }
  0xe8   : > { %v1812_v54 = vpop.permute.xlu1 %772 }
  0xeb   : > { %v1818_v57 = vpop.permute.xlu0 %720 }
  0xec   : > { %v1816_v56 = vpop.permute.xlu1 %761 }
 0x129   : > { %v409_v28 = vpop.f32.mrb[0].mxu0 }
 0x12a   : > { %v410_v29 = vadd.f32 %v409_v28, %v337_v27  ;;  %v411_v30 = vpop.f32.mrb[1].mxu0 }
 0x12b   : > { %v412_v31 = vadd.f32 %v411_v30, %v337_v27  ;;  %v435_v27 = vrot.slane %v426_v15, %v1828_v8 }
 0x12c   : > { %v414_v32 = vmax.f32 %v410_v29, 0.0  ;;  %v517_v29 = vrot.slane %v1258_v17, %v1828_v8 }
 0x12d   : > { %v415_v33 = vmax.f32 %v412_v31, 0.0 }
 0x12f   : > { %v1712_v34 = vcombine.low %v414_v32, %v415_v33  ;;  %v1725_v41 = vcombine.low %v415_v33, %v415_v33 }
 0x131   : > { %422 = vst [vmem:[#allocation2 + $0x4] sm:$0xff] %v1712_v34  ;;  %v604_v20 = vmul.f32 %v594_v12, %v1712_v34  ;;  %v605_v23 = vmul.f32 %v1725_v41, %v598_v14  ;;  %v751_v12 = vrot.slane %v1868_v62, %v1828_v8 }
 0x138   : > { %v546_v35 = vld [vmem:[#allocation2 + $0x8] sm:$0xf]  ;;  %v545_v37 = vld [vmem:[#allocation2] sm:$0xff] }
 0x139   : > { %v424_v36 = vld [vmem:[#allocation2 + $0x8] sm:$0xf]  ;;  %568 = vrot.lane.b32.xlu0 %v546_v35, %s1519_s20  ;;  %v563_v39 = vcombine.high %v545_v37, %v545_v37  ;;  %v1261_v35 = vld [vmem:[%s2056_s7 + $0x5] ss:$8 sm:$0x3] }
 0x13a   : > { %445 = vrot.lane.b32.xlu1 %v424_v36, %s1520_s23  ;;  %v464_v38 = vld [vmem:[#allocation2 + $0x8] sm:$0xf] }
 0x13b   : > { %v505_v40 = vld [vmem:[#allocation2 + $0x8] sm:$0xf] }
 0x13d   : > { %564 = vrot.lane.b32.xlu0 %v545_v37, %s1519_s20 }
 0x13e   : > { %486 = vrot.lane.b32.xlu1 %v464_v38, %s1521_s17 }
 0x141   : > { %675 = vrot.lane.b32.xlu0 %v1712_v34, %s1516_s13 }
 0x142   : > { %441 = vrot.lane.b32.xlu1 %v545_v37, %s1520_s23 }
 0x145   : > { %443 = vrot.lane.b32.xlu0 %v563_v39, %s1520_s23 }
 0x146   : > { %482 = vrot.lane.b32.xlu1 %v545_v37, %s1521_s17 }
 0x149   : > { %484 = vrot.lane.b32.xlu0 %v563_v39, %s1521_s17 }
 0x14a   : > { %527 = vrot.lane.b32.xlu1 %v505_v40, %s1522_s21  ;;  %v1259_v40 = vld [vmem:[%s2056_s7 + $0x3] ss:$8 sm:$0x3] }
 0x14b   : > { %v558_v9 = vrot.slane %v1259_v40, %v1828_v8 }
 0x14d   : > { %525 = vrot.lane.b32.xlu0 %v563_v39, %s1522_s21 }
 0x14e   : > { %523 = vrot.lane.b32.xlu1 %v545_v37, %s1522_s21  ;;  %v611_v37 = vmul.f32 %v609_v48, %v604_v20 }
 0x151   : > { %636 = vrot.lane.b32.xlu0 %v1725_v41, %s1514_s12 }
 0x152   : > { %634 = vrot.lane.b32.xlu1 %v1712_v34, %s1514_s12 }
 0x155   : > { %759 = vrot.lane.b32.xlu0 %v1725_v41, %s1517_s18 }
 0x156   : > { %716 = vrot.lane.b32.xlu1 %v1712_v34, %s1518_s19 }
 0x159   : > { %782 = vperm.xlu0 %1370, %v779_v42  }
 0x15a   : > { %566 = vrot.lane.b32.xlu1 %v563_v39, %s1519_s20 }
 0x15d   : > { %926 = vrot.lane.b32.xlu0 %v1701_v4, %s1520_s23 }
 0x15e   : > { %677 = vrot.lane.b32.xlu1 %v1725_v41, %s1516_s13 }
 0x161   : > { %950 = vrot.lane.b32.xlu0 %v1505_v0, %s1521_s17 }
 0x162   : > { %718 = vrot.lane.b32.xlu1 %v1725_v41, %s1518_s19  ;;  %v612_v41 = vmul.f32 %v609_v48, %v605_v23 }
 0x165   : > { %954 = vrot.lane.b32.xlu0 %v1699_v3, %s1521_s17 }
 0x166   : > { %757 = vrot.lane.b32.xlu1 %v1712_v34, %s1517_s18 }
 0x169   : > { %978 = vrot.lane.b32.xlu0 %v1701_v4, %s1522_s21 }
 0x16a   : > { %924 = vrot.lane.b32.xlu1 %v1505_v0, %s1520_s23 }
 0x16d   : > { %1002 = vrot.lane.b32.xlu0 %v1505_v0, %s1519_s20 }
 0x16e   : > { %928 = vrot.lane.b32.xlu1 %v1699_v3, %s1520_s23  ;;  %s322_s23 = sand.u32 1, %s1493_s28  }
 0x16f   : > { %s2007_s9 = scalar_lea.sflag [#allocation6], %s322_s23 }
 0x171   : > { %1006 = vrot.lane.b32.xlu0 %v1699_v3, %s1519_s20 }
 0x172   : > { %952 = vrot.lane.b32.xlu1 %v1701_v4, %s1521_s17 }
 0x175   : > { %1052 = vrot.lane.b32.xlu0 %v1699_v3, %s1514_s12 }
 0x176   : > { %976 = vrot.lane.b32.xlu1 %v1505_v0, %s1522_s21 }
 0x179   : > { %1076 = vrot.lane.b32.xlu0 %v1701_v4, %s1516_s13 }
 0x17a   : > { %980 = vrot.lane.b32.xlu1 %v1699_v3, %s1522_s21  ;;  %s1281_s21 = smul.u32 48, %s322_s23 }
 0x17c   : > { %s324_s22 = scalar_lea.vmem [#allocation9], %s1281_s21 }
 0x17d   : > { %1080 = vrot.lane.b32.xlu0 %v1505_v0, %s1516_s13  ;;  %s1162_s24 = sshll.u32 %s324_s22, 4  ;;  %s1998_s24 = int_to_ptr.vmem [resolvable:$true] %s1162_s24 }
 0x17e   : > { %1004 = vrot.lane.b32.xlu1 %v1701_v4, %s1519_s20  ;;  %s2003_s20 = scalar_lea.hbm %s2057_s8, %s1282_s25 }
 0x181   : > { %800 = vperm.xlu0 %1370, %v792_v43  }
 0x182   : > { %1050 = vrot.lane.b32.xlu1 %v1701_v4, %s1514_s12 }
 0x185   : > { %1104 = vrot.lane.b32.xlu0 %v1699_v3, %s1518_s19 }
 0x186   : > { %1054 = vrot.lane.b32.xlu1 %v1505_v0, %s1514_s12  ;;  %s1431_s12 = scalar_lea.vmem %s1998_s24, 768 }
 0x187   : > { %p1432_p12 = scmp.ne.s32.totalorder %s1998_s24, %s1431_s12 }
 0x189   : > { %1128 = vrot.lane.b32.xlu0 %v1701_v4, %s1517_s18  ;;  %p1433_p2 = pnand %p1432_p12, %p2070_p1 }
 0x18a   : > { %1078 = vrot.lane.b32.xlu1 %v1699_v3, %s1516_s13  ;;  %s1523_s13 = smov [#allocation9]  }
 0x18b   : > { %p1434_p3 = pneg %p1433_p2 }
 0x18d   : > { %1132 = vrot.lane.b32.xlu0 %v1505_v0, %s1517_s18 }
 0x18e   : > { %795 = vperm.xlu1 %1372, %v791_v47   ;;  %v624_v47 = vrot.slane %v1261_v35, %v1826_v7 }
 0x192   : > { %1102 = vrot.lane.b32.xlu1 %v1701_v4, %s1518_s19 }
 0x196   : > { %1106 = vrot.lane.b32.xlu1 %v1505_v0, %s1518_s19 }
 0x19a   : > { %1130 = vrot.lane.b32.xlu1 %v1699_v3, %s1517_s18  ;;  %s1435_s18 = sshll.u32 %s1523_s13, 4  ;;  %s1436_s18 = int_to_ptr.vmem [resolvable:$false] %s1435_s18 }
 0x19b   : > { %s1437_s19 = scalar_lea.vmem %s1436_s18, 1536  ;;  %p1438_p4 = scmp.lt.s32.totalorder %s1998_s24, %s1436_s18 }
 0x19c   : > { %p1439_p7 = scmp.lt.s32.totalorder %s1437_s19, %s1431_s12 }
 0x19e   : > { %p1440_p8 = por %p1439_p7, %p1438_p4 }
 0x1a0   : > { %p1441_p11 = pnand %p1440_p8, %p1434_p3 }
 0x1ab   : > { %v1820_v58 = vpop.permute.xlu0 %568 }
 0x1ac   : > { %v446_v59 = vpop.permute.xlu1 %445 }
 0x1af   : > { %v1822_v60 = vpop.permute.xlu0 %564 }
 0x1b0   : > { %v487_v61 = vpop.permute.xlu1 %486 }
 0x1b3   : > { %v1824_v63 = vpop.permute.xlu0 %675 }
 0x1b4   : > { %v442_v1 = vpop.permute.xlu1 %441 }
 0x1b7   : > { %v444_v6 = vpop.permute.xlu0 %443 }
 0x1b8   : > { %v483_v5 = vpop.permute.xlu1 %482  ;;  %v448_v28 = vsel %vm447_vm2, %v442_v1, %v444_v6  ;;  %v449_v32 = vsel %vm447_vm2, %v444_v6, %v446_v59  ;;  %v1262_v1 = vld [vmem:[%s2056_s7 + $0x6] ss:$8 sm:$0x3]  ;;  %v554_v6 = vrot.slane %v1259_v40, %v1826_v7 }
 0x1b9   : > { %v452_v38 = vmul.f32 %v448_v28, %v431_v24  ;;  %v453_v42 = vmul.f32 %v449_v32, %v435_v27  ;;  %v665_v13 = vrot.slane %v1262_v1, %v1826_v7  ;;  %v669_v17 = vrot.slane %v1262_v1, %v1828_v8 }
 0x1bb   : > { %v485_v11 = vpop.permute.xlu0 %484  ;;  %v460_v14 = vmul.f32 %v1806_v52, %v453_v42 }
 0x1bc   : > { %v528_v10 = vpop.permute.xlu1 %527  ;;  %v489_v22 = vsel %vm488_vm1, %v483_v5, %v485_v11  ;;  %v490_v25 = vsel %vm488_vm1, %v485_v11, %v487_v61  ;;  %v628_v5 = vrot.slane %v1261_v35, %v1828_v8 }
 0x1bd   : > { %v493_v33 = vmul.f32 %v489_v22, %v472_v18  ;;  %v494_v36 = vmul.f32 %v490_v25, %v476_v21  ;;  %v1263_v18 = vld [vmem:[%s2056_s7 + $0x7] ss:$8 sm:$0x3] }
 0x1be   : > { %v706_v27 = vrot.slane %v1263_v18, %v1826_v7  ;;  %v710_v28 = vrot.slane %v1263_v18, %v1828_v8  ;;  %v1269_v18 = vld [vmem:[%s2056_s7 + $0x1] ss:$8 sm:$0x3] }
 0x1bf   : > { %v526_v19 = vpop.permute.xlu0 %525  ;;  %v500_v2 = vmul.f32 %v1777_v44, %v493_v33  ;;  %v501_v48 = vmul.f32 %v1777_v44, %v494_v36 }
 0x1c0   : > { %v524_v16 = vpop.permute.xlu1 %523  ;;  %v531_v34 = vsel %vm529_vm3, %v526_v19, %v528_v10  ;;  %v459_v10 = vmul.f32 %v1806_v52, %v452_v38 }
 0x1c1   : > { %v530_v30 = vsel %vm529_vm3, %v524_v16, %v526_v19  ;;  %v535_v43 = vmul.f32 %v531_v34, %v517_v29 }
 0x1c2   : > { %v534_v39 = vmul.f32 %v530_v30, %v513_v26  ;;  %v502_v19 = vadd.f32 %v500_v2, %v459_v10 }
 0x1c3   : > { %v637_v59 = vpop.permute.xlu0 %636  ;;  %v542_v15 = vmul.f32 %v1785_v46, %v535_v43 }
 0x1c4   : > { %v635_v31 = vpop.permute.xlu1 %634  ;;  %v541_v11 = vmul.f32 %v1785_v46, %v534_v39  ;;  %v642_v20 = vsel %vm640_vm4, %v637_v59, %v1810_v53  ;;  %v503_v46 = vadd.f32 %v501_v48, %v460_v14 }
 0x1c5   : > { %v641_v44 = vsel %vm640_vm4, %v635_v31, %v637_v59  ;;  %v646_v30 = vmul.f32 %v642_v20, %v628_v5 }
 0x1c6   : > { %v543_v25 = vadd.f32 %v541_v11, %v502_v19  ;;  %v645_v26 = vmul.f32 %v641_v44, %v624_v47  ;;  %v544_v29 = vadd.f32 %v542_v15, %v503_v46 }
 0x1c7   : > { %v760_v22 = vpop.permute.xlu0 %759  ;;  %v653_v40 = vmul.f32 %v1796_v49, %v646_v30  ;;  %v1270_v30 = vld [vmem:[%s2056_s7 + $0x2] ss:$8 sm:$0x3] }
 0x1c8   : > { %v717_v61 = vpop.permute.xlu1 %716  ;;  %v652_v39 = vmul.f32 %v1796_v49, %v645_v26  ;;  %v943_v26 = vrot.slane %v1269_v18, %v1826_v7 }
 0x1cc   : > { %v567_v16 = vpop.permute.xlu1 %566 }
 0x1cd   : > { %v571_v21 = vsel %vm570_vm6, %v1822_v60, %v567_v16  ;;  %v572_v52 = vsel %vm570_vm6, %v567_v16, %v1820_v58  ;;  %v765_v58 = vsel %vm763_vm5, %v760_v22, %v1816_v56  ;;  %v906_v16 = vld [vmem:[%s2056_s7] ss:$8 sm:$0x3] }
 0x1ce   : > { %v575_v23 = vmul.f32 %v571_v21, %v554_v6  ;;  %v576_v24 = vmul.f32 %v572_v52, %v558_v9  ;;  %v769_v42 = vmul.f32 %v765_v58, %v751_v12  ;;  %v914_v21 = vrot.slane %v906_v16, %v1826_v7  ;;  %v790_v58 = vld [vmem:[%s2054_s5 + $0x8] sm:$0xff] }
 0x1d0   : > { %v582_v53 = vmul.f32 %v1783_v45, %v575_v23  ;;  %v583_v60 = vmul.f32 %v1783_v45, %v576_v24  ;;  %v678_v31 = vpop.permute.xlu1 %677  ;;  %v747_v45 = vrot.slane %v1868_v62, %v1826_v7  ;;  %v789_v24 = vld [vmem:[%s2054_s5] sm:$0xff] }
 0x1d1   : > { %v682_v32 = vsel %vm681_vm7, %v1824_v63, %v678_v31  ;;  %v683_v33 = vsel %vm681_vm7, %v678_v31, %v1814_v55 }
 0x1d2   : > { %v584_v34 = vadd.f32 %v582_v53, %v543_v25  ;;  %v585_v35 = vadd.f32 %v583_v60, %v544_v29  ;;  %v686_v36 = vmul.f32 %v682_v32, %v665_v13  ;;  %v687_v38 = vmul.f32 %v683_v33, %v669_v17 }
 0x1d4   : > { %v613_v56 = vadd.f32 %v611_v37, %v584_v34  ;;  %v614_v43 = vadd.f32 %v612_v41, %v585_v35  ;;  %v719_v47 = vpop.permute.xlu1 %718  ;;  %v693_v63 = vmul.f32 %v1802_v51, %v686_v36  ;;  %v694_v55 = vmul.f32 %v1802_v51, %v687_v38 }
 0x1d5   : > { %v723_v59 = vsel %vm722_vm8, %v717_v61, %v719_v47  ;;  %v724_v1 = vsel %vm722_vm8, %v719_v47, %v1818_v57  ;;  %v776_v51 = vmul.f32 %v1812_v54, %v769_v42  ;;  %v969_v35 = vrot.slane %v1270_v30, %v1826_v7 }
 0x1d6   : > { %v654_v2 = vadd.f32 %v652_v39, %v613_v56  ;;  %v655_v5 = vadd.f32 %v653_v40, %v614_v43  ;;  %v727_v48 = vmul.f32 %v723_v59, %v706_v27  ;;  %v728_v6 = vmul.f32 %v724_v1, %v710_v28  ;;  %v1271_v56 = vld [vmem:[%s2056_s7 + $0x3] ss:$8 sm:$0x3]  ;;  %v1272_v43 = vld [vmem:[%s2056_s7 + $0x4] ss:$8 sm:$0x3] }
 0x1d7   : > { %v947_v27 = vrot.slane %v1269_v18, %v1828_v8 }
 0x1d8   : > { %v695_v62 = vadd.f32 %v693_v63, %v654_v2  ;;  %v696_v9 = vadd.f32 %v694_v55, %v655_v5  ;;  %v734_v49 = vmul.f32 %v1800_v50, %v727_v48  ;;  %v735_v37 = vmul.f32 %v1800_v50, %v728_v6  ;;  %v758_v41 = vpop.permute.xlu1 %757  ;;  %v783_v11 = vpop.permute.xlu0 %782 }
 0x1d9   : > { %v764_v10 = vsel %vm763_vm5, %v758_v41, %v760_v22  ;;  %v918_v22 = vrot.slane %v906_v16, %v1828_v8  ;;  %v995_v2 = vrot.slane %v1271_v56, %v1826_v7  ;;  %v1021_v5 = vrot.slane %v1272_v43, %v1826_v7 }
 0x1da   : > { %v768_v61 = vmul.f32 %v764_v10, %v747_v45  ;;  %v737_v12 = vadd.f32 %v735_v37, %v696_v9  ;;  %v736_v13 = vadd.f32 %v734_v49, %v695_v62  ;;  %v999_v48 = vrot.slane %v1271_v56, %v1828_v8  ;;  %v1273_v9 = vld [vmem:[%s2056_s7 + $0x5] ss:$8 sm:$0x3] }
 0x1db   : > { %v1025_v49 = vrot.slane %v1272_v43, %v1828_v8 }
 0x1dc   : > { %v775_v57 = vmul.f32 %v1812_v54, %v768_v61  ;;  %v778_v14 = vadd.f32 %v776_v51, %v737_v12  ;;  %v925_v15 = vpop.permute.xlu1 %924  ;;  %v927_v44 = vpop.permute.xlu0 %926  ;;  %v1028_v51 = vmul.f32 %v1021_v5, %v1701_v4  ;;  %v1040_v12 = vrot.slane %v1273_v9, %v1826_v7 }
 0x1dd   : > { %v930_v46 = vsel %vm447_vm2, %v925_v15, %v927_v44 }
 0x1de   : > { %v777_v17 = vadd.f32 %v775_v57, %v736_v13  ;;  %v786_v50 = vadd.f32 %v783_v11, %v778_v14  ;;  %v934_v28 = vmul.f32 %v930_v46, %v914_v21  ;;  %v1029_v14 = vmul.f32 %v1025_v49, %v1699_v3 }
 0x1e0   : > { %v785_v19 = vadd.f32 %v783_v11, %v777_v17  ;;  %v788_v20 = vmax.f32 %v786_v50, 0.0  ;;  %v929_v54 = vpop.permute.xlu1 %928  ;;  %v951_v52 = vpop.permute.xlu0 %950  ;;  %v1044_v50 = vrot.slane %v1273_v9, %v1828_v8 }
 0x1e1   : > { %v931_v25 = vsel %vm447_vm2, %v927_v44, %v929_v54 }
 0x1e2   : > { %v787_v23 = vmax.f32 %v785_v19, 0.0  ;;  %1265 = vmatprep.subr.msk.mxu1 %vm810_vm9, %v788_v20  ;;  %v935_v60 = vmul.f32 %v931_v25, %v918_v22  ;;  %v1274_v19 = vld [vmem:[%s2056_s7 + $0x6] ss:$8 sm:$0x3] }
 0x1e3   : > { %v1069_v3 = vrot.slane %v1274_v19, %v1826_v7  ;;  %v1073_v22 = vrot.slane %v1274_v19, %v1828_v8 }
 0x1e4   : > { %1266 = vmatpush1.msk.msra.mxu1 %vm810_vm9, %v787_v23  ;;  %v953_v29 = vpop.permute.xlu1 %952  ;;  %v955_v53 = vpop.permute.xlu0 %954 }
 0x1e5   : > { %1267 = vmatmul.mubr.msk.f32.vlgmr.msra.gmra.mrb[0].mxu1 %vm803_vm10, %v789_v24  ;;  %v956_v31 = vsel %vm488_vm1, %v951_v52, %v953_v29  ;;  %v957_v32 = vsel %vm488_vm1, %v953_v29, %v955_v53 }
 0x1e6   : > { %887 = vmatprep.mubr.f32.mxu1 %v1505_v0  ;;  %v960_v33 = vmul.f32 %v956_v31, %v943_v26  ;;  %v961_v34 = vmul.f32 %v957_v32, %v947_v27  ;;  %v973_v0 = vrot.slane %v1270_v30, %v1828_v8  ;;  %v1275_v32 = vld [vmem:[%s2056_s7 + $0x7] ss:$8 sm:$0x3] }
 0x1e8   : > { %v962_v36 = vadd.f32 %v960_v33, %v934_v28  ;;  %v977_v38 = vpop.permute.xlu1 %976  ;;  %v979_v39 = vpop.permute.xlu0 %978  ;;  %v963_v45 = vadd.f32 %v961_v34, %v935_v60  ;;  %v1095_v34 = vrot.slane %v1275_v32, %v1826_v7 }
 0x1e9   : > { %1268 = vmatmul.mubr.msk.f32.gmra.mrb[2].mxu1 %vm803_vm10, %v790_v58  ;;  %v982_v40 = vsel %vm529_vm3, %v977_v38, %v979_v39  ;;  %v1099_v38 = vrot.slane %v1275_v32, %v1828_v8 }
 0x1ea   : > { %v986_v42 = vmul.f32 %v982_v40, %v969_v35 }
 0x1ec   : > { %v981_v47 = vpop.permute.xlu1 %980  ;;  %v1003_v63 = vpop.permute.xlu0 %1002  ;;  %v988_v55 = vadd.f32 %v986_v42, %v962_v36 }
 0x1ed   : > { %v983_v59 = vsel %vm529_vm3, %v979_v39, %v981_v47  ;;  %v1276_v39 = vld [vmem:[%s2056_s7 + $0x10] ss:$8 sm:$0x3] }
 0x1ee   : > { %v987_v1 = vmul.f32 %v983_v59, %v973_v0  ;;  %v1121_v56 = vrot.slane %v1276_v39, %v1826_v7  ;;  %v1125_v43 = vrot.slane %v1276_v39, %v1828_v8 }
 0x1f0   : > { %v989_v6 = vadd.f32 %v987_v1, %v963_v45  ;;  %v1005_v62 = vpop.permute.xlu1 %1004  ;;  %v1007_v37 = vpop.permute.xlu0 %1006 }
 0x1f1   : > { %v1008_v41 = vsel %vm570_vm6, %v1003_v63, %v1005_v62  ;;  %v1009_v10 = vsel %vm570_vm6, %v1005_v62, %v1007_v37 }
 0x1f2   : > { %v1012_v11 = vmul.f32 %v1008_v41, %v995_v2  ;;  %v1013_v61 = vmul.f32 %v1009_v10, %v999_v48 }
 0x1f4   : > { %v1014_v57 = vadd.f32 %v1012_v11, %v988_v55  ;;  %v1051_v13 = vpop.permute.xlu1 %1050  ;;  %v1053_v15 = vpop.permute.xlu0 %1052  ;;  %v1015_v44 = vadd.f32 %v1013_v61, %v989_v6 }
 0x1f5   : > { %v1056_v17 = vsel %vm640_vm4, %v1051_v13, %v1053_v15 }
 0x1f6   : > { %v1030_v16 = vadd.f32 %v1028_v51, %v1014_v57  ;;  %v1060_v18 = vmul.f32 %v1056_v17, %v1040_v12  ;;  %v1031_v20 = vadd.f32 %v1029_v14, %v1015_v44 }
 0x1f8   : > { %v1055_v4 = vpop.permute.xlu1 %1054  ;;  %v1077_v21 = vpop.permute.xlu0 %1076  ;;  %v1062_v54 = vadd.f32 %v1060_v18, %v1030_v16 }
 0x1f9   : > { %v1057_v52 = vsel %vm640_vm4, %v1053_v15, %v1055_v4 }
 0x1fa   : > { %v1061_v46 = vmul.f32 %v1057_v52, %v1044_v50 }
 0x1fc   : > { %v1063_v23 = vadd.f32 %v1061_v46, %v1031_v20  ;;  %v1079_v24 = vpop.permute.xlu1 %1078  ;;  %v1081_v25 = vpop.permute.xlu0 %1080 }
 0x1fd   : > { %v1082_v26 = vsel %vm681_vm7, %v1077_v21, %v1079_v24  ;;  %v1083_v27 = vsel %vm681_vm7, %v1079_v24, %v1081_v25 }
 0x1fe   : > { %v1086_v28 = vmul.f32 %v1082_v26, %v1069_v3  ;;  %v1087_v29 = vmul.f32 %v1083_v27, %v1073_v22 }
 0x200   : > { %v1088_v30 = vadd.f32 %v1086_v28, %v1062_v54  ;;  %v1089_v53 = vadd.f32 %v1087_v29, %v1063_v23  ;;  %v801_v60 = vpop.permute.xlu0 %800 }
 0x204   : > { %v1105_v31 = vpop.permute.xlu0 %1104 }
 0x208   : > { %v1129_v35 = vpop.permute.xlu0 %1128 }
 0x20c   : > { %v1133_v47 = vpop.permute.xlu0 %1132 }
 0x20d   : > { %v796_v58 = vpop.permute.xlu1 %795 }
 0x211   : > { %v1103_v33 = vpop.permute.xlu1 %1102 }
 0x212   : > { %v1108_v36 = vsel %vm722_vm8, %v1103_v33, %v1105_v31 }
 0x213   : > { %v1112_v45 = vmul.f32 %v1108_v36, %v1095_v34 }
 0x215   : > { %v1107_v40 = vpop.permute.xlu1 %1106  ;;  %v1114_v63 = vadd.f32 %v1112_v45, %v1088_v30 }
 0x216   : > { %v1109_v0 = vsel %vm722_vm8, %v1105_v31, %v1107_v40 }
 0x217   : > { %v1113_v42 = vmul.f32 %v1109_v0, %v1099_v38 }
 0x219   : > { %v1115_v55 = vadd.f32 %v1113_v42, %v1089_v53  ;;  %v1131_v59 = vpop.permute.xlu1 %1130 }
 0x21a   : > { %v1134_v1 = vsel %vm763_vm5, %v1129_v35, %v1131_v59  ;;  %v1135_v2 = vsel %vm763_vm5, %v1131_v59, %v1133_v47 }
 0x21b   : > { %v1138_v5 = vmul.f32 %v1134_v1, %v1121_v56  ;;  %v1139_v48 = vmul.f32 %v1135_v2, %v1125_v43 }
 0x21d   : > { %v1140_v6 = vadd.f32 %v1138_v5, %v1114_v63  ;;  %v1141_v62 = vadd.f32 %v1139_v48, %v1115_v55 }
 0x21f   : > { %v1142_v9 = vmul.f32 0.11111111, %v1140_v6  ;;  %v1143_v7 = vmul.f32 0.11111111, %v1141_v62 }
 0x221   : > { %v1144_v49 = vmax.f32 %v1142_v9, 0.0  ;;  %v1145_v8 = vmax.f32 %v1143_v7, 0.0 }
 0x223   : > { %1146 = vst [vmem:[%s324_s22 + $0x20] sm:$0xff] %v1144_v49  ;;  %1147 = vst [vmem:[%s324_s22 + $0x28] sm:$0xff] %v1145_v8 }
 0x2b8   : > { %v883_v37 = vpop.f32.mrb[0].mxu1 }
 0x2b9   : > { %v884_v41 = vadd.f32 %v883_v37, %v796_v58  ;;  %v885_v10 = vpop.f32.mrb[1].mxu1 }
 0x2ba   : > { %v886_v11 = vadd.f32 %v885_v10, %v796_v58 }
 0x2bb   : > { %v894_v51 = vmax.f32 %v884_v41, 0.0 }
 0x2bc   : > { %v895_v61 = vmax.f32 %v886_v11, 0.0  ;;  %v889_v12 = vpop.f32.mrb[2].mxu1 }
 0x2bd   : > { %898 = vst [vmem:[%s324_s22] sm:$0xff] %v894_v51  ;;  %v890_v57 = vadd.f32 %v889_v12, %v801_v60  ;;  %v891_v13 = vpop.f32.mrb[3].mxu1 }
 0x2be   : > { %899 = vst [vmem:[%s324_s22 + $0x8] sm:$0xff] %v895_v61  ;;  %v892_v14 = vadd.f32 %v891_v13, %v801_v60 }
 0x2bf   : > { %v896_v15 = vmax.f32 %v890_v57, 0.0 }
 0x2c0   : > { %v897_v44 = vmax.f32 %v892_v14, 0.0 }
 0x2c1   : > { %900 = vst [vmem:[%s324_s22 + $0x10] sm:$0xff] %v896_v15 }
 0x2c2   : > { %901 = vst [vmem:[%s324_s22 + $0x18] sm:$0xff] %v897_v44 }
 0x2c3   : > { %1444 = shalt.err (!%p1441_p11)
}
 0x2c4   : > { %s1445_s23 = scalar_lea.hbm %s2003_s20, 768  ;;  %s1449_s25 = scalar_lea.hbm %s2057_s8, 1536 }
 0x2c5   : > { %p1446_p13 = scmp.ne.s32.totalorder %s2003_s20, %s1445_s23  ;;  %p1450_p5 = scmp.lt.u32.totalorder %s2003_s20, %s2057_s8 }
 0x2c6   : > { %p1451_p9 = scmp.lt.u32.totalorder %s1449_s25, %s1445_s23  ;;  %p1453_p12 = scmp.lt.u32.totalorder %s1445_s23, %s2003_s20 }
 0x2c7   : > { %p1447_p6 = pnand %p1446_p13, %p2070_p1 }
 0x2c8   : > { %p1452_p10 = por %p1451_p9, %p1450_p5 }
 0x2c9   : > { %p1448_p0 = pneg %p1447_p6 }
 0x2ca   : > { %p1454_p2 = por %p1453_p12, %p1452_p10 }
 0x2cc   : > { %p1455_p3 = pnand %p1454_p2, %p1448_p0 }
 0x2ce   : > { %1458 = shalt.err (!%p1455_p3)
}
 0x2cf   : > { %s1524_s12 = smov 256  }
 0x2d0   : > { %1291 = dma.vmem_to_hbm [thread:$0]  (%p2070_p1), %s1998_s24, 768, %s2003_s20, %s2007_s9, %s1524_s12, %s1524_s12, %s1521_s17  }
 0x2d1 PF: > { %p1308_p4 = scmp.ge.s32.totalorder %s1501_s30, 2  ;;  %s1177_s13 = sand.u32 1, %s1489_s27  }
 0x2d2   : > { %p2071_p7 = scmp.ne.s32.totalorder %s2062_s16, 0  ;;  %s1178_s18 = scalar_lea.sflag [#allocation6], %s1177_s13 }
 0x2d4   : > { %p1301_p8 = pnand %p1308_p4, %p2071_p7 }
 0x2d6   : > { %1484 = dma.done.wait (!%p1301_p8), %s1178_s18, 768  }
 0x2d7   : > { %1486 = vsyncadd (!%p1301_p8), %s1178_s18, 4294966528  ;;  %p20_p11 = scmp.ge.s32.totalorder %s1595_s11, 4   ;;  %s2072_s27 = smov %s1493_s28 }
 0x2d8   : > { %s2073_s28 = smov %s1497_s29  ;;  %s2074_s29 = smov %s1606_s14 }
 0x2d9   : > { %s2075_s30 = smov %s1595_s11  ;;  %22 = sbr.rel (!%p20_p11) target bundleno = 5 (0x5), region = 104 }
 0x2e0   :  { %1183 = vsyncpa [#allocation5], 1 }
 0x2e1   :  { %1185 = vsyncpa [#allocation5 + $0x1], 1 }
 0x2e2   :  { %1186 = vsyncpa [#allocation8], 1 }
 0x2e3   :  { %1187 = vsyncpa [#allocation6], 1 }
 0x2e4   :  { %1189 = vsyncpa [#allocation6 + $0x1], 1 }

</bundles_post_ra>
